<compile_context>
chip_gen: v7x
topology: tpu7x:2x2x1
jax: 0.10.0
libtpu: 0.0.40
codegen_flags: <defaults>
</compile_context>

<pallas_src>
import functools

import jax
import jax.numpy as jnp
from jax.experimental import pallas as pl
from jax.experimental.pallas import tpu as pltpu


def _round_up(x, m):
    return ((x + m - 1) // m) * m


def _generator_kernel(x_ref, w1_ref, b1_ref, w2_ref, b2_ref, w3_ref, b3_ref, o_ref,
                      *, epilogue_dtype):
    cdt = w1_ref.dtype  # compute dtype for MXU operands (bf16 or f32)

    # Layer 1: Linear + ReLU (f32 accumulation)
    h = jnp.dot(x_ref[...].astype(cdt), w1_ref[...],
                preferred_element_type=jnp.float32)
    h = jnp.maximum(h + b1_ref[...], 0.0)

    # Layer 2: Linear + ReLU
    h = jnp.dot(h.astype(cdt), w2_ref[...], preferred_element_type=jnp.float32)
    h = jnp.maximum(h + b2_ref[...], 0.0)

    # Layer 3: Linear + Tanh (tanh in bf16 on v6e/v7x, f32 on v5e)
    h = jnp.dot(h.astype(cdt), w3_ref[...], preferred_element_type=jnp.float32)
    h = (h + b3_ref[...]).astype(epilogue_dtype)
    o_ref[...] = jnp.tanh(h).astype(o_ref.dtype)


def generator_forward(x, params, *, batch_tile=1024, compute_dtype=jnp.bfloat16,
                      out_dtype=None):
    """x: (B, input_size) float32. params: dict of w1,b1,w2,b2,w3,b3 (f32)."""
    B, D = x.shape
    H1 = params["w1"].shape[1]   # 256
    H2 = params["w2"].shape[1]   # 256
    OUT = params["w3"].shape[1]  # 784

    SUB = 8
    if out_dtype is None:
        out_dtype = compute_dtype

    # ---- Batch tile selection (no explicit padding; ragged last block is masked). ----
    bt = max(SUB, min(_round_up(batch_tile, SUB), _round_up(B, SUB), 2048))
    if B < SUB:
        bt = B                       # block == full dim, no OOB rows at all
    # Keep >= 2 grid steps for mid/large batches so the "parallel" axis can be
    # sharded across v7x's two TensorCores (no cost on v5e/v6e).
    if B >= 2 * SUB and pl.cdiv(B, bt) < 2:
        bt = max(SUB, _round_up(pl.cdiv(B, 2), SUB))
    grid = (pl.cdiv(B, bt),)

    # ---- Operand dtypes: bf16 MXU operands by default, f32 accumulation in-kernel. ----
    w1 = params["w1"].astype(compute_dtype)
    w2 = params["w2"].astype(compute_dtype)
    w3 = params["w3"].astype(compute_dtype)
    b1 = params["b1"].astype(jnp.float32)
    b2 = params["b2"].astype(jnp.float32)
    b3 = params["b3"].astype(jnp.float32)

    # Tanh epilogue dtype: bf16 only where the EUP has a bf16 datapath (v6e / v7x).
    is_bf16 = jnp.dtype(compute_dtype) == jnp.dtype(jnp.bfloat16)
    try:
        dev_kind = jax.devices()[0].device_kind.lower()
    except Exception:
        dev_kind = ""
    is_v5 = "v5" in dev_kind
    epilogue_dtype = jnp.bfloat16 if (is_bf16 and not is_v5) else jnp.float32

    # ---- VMEM budget for the chosen tile (sized from the chip's physical VMEM). ----
    wbytes = jnp.dtype(compute_dtype).itemsize
    obytes = jnp.dtype(out_dtype).itemsize
    vmem_needed = (
        2 * bt * D * 4                                   # x tiles (double-buffered)
        + 2 * bt * OUT * obytes                          # out tiles (double-buffered)
        + 2 * (D * H1 + H1 * H2 + H2 * OUT) * wbytes     # weights (double-buffered)
        + 2 * (H1 + H2 + OUT) * 4                        # biases
        + 4 * bt * max(H1, H2, OUT) * 4                  # f32 intermediates headroom
    )
    try:
        vmem_cap = int(pltpu.get_tpu_info().vmem_capacity_bytes)
    except Exception:
        vmem_cap = 64 << 20                              # conservative (v7x) fallback
    vmem_limit = int(min(max(int(1.5 * vmem_needed), 16 << 20), int(0.75 * vmem_cap)))

    flops = int(2 * B * (D * H1 + H1 * H2 + H2 * OUT))
    bytes_accessed = int(
        B * D * 4 + B * OUT * obytes
        + (D * H1 + H1 * H2 + H2 * OUT) * wbytes
        + (H1 + H2 + OUT) * 4
    )

    const = lambda i: (0, 0)   # weights / biases: same block every step (stay resident)

    out = pl.pallas_call(
        functools.partial(_generator_kernel, epilogue_dtype=epilogue_dtype),
        out_shape=jax.ShapeDtypeStruct((B, OUT), out_dtype),
        grid_spec=pltpu.PrefetchScalarGridSpec(
            num_scalar_prefetch=0,
            grid=grid,
            in_specs=[
                pl.BlockSpec((bt, D), lambda i: (i, 0)),   # x tile
                pl.BlockSpec((D, H1), const),              # w1
                pl.BlockSpec((1, H1), const),              # b1
                pl.BlockSpec((H1, H2), const),             # w2
                pl.BlockSpec((1, H2), const),              # b2
                pl.BlockSpec((H2, OUT), const),            # w3
                pl.BlockSpec((1, OUT), const),             # b3
            ],
            out_specs=pl.BlockSpec((bt, OUT), lambda i: (i, 0)),
        ),
        compiler_params=pltpu.CompilerParams(
            dimension_semantics=("parallel",),
            vmem_limit_bytes=vmem_limit,
        ),
        cost_estimate=pl.CostEstimate(
            flops=flops,
            transcendentals=int(B * OUT),
            bytes_accessed=bytes_accessed,
        ),
    )(x, w1, b1, w2, b2, w3, b3)

    return out


def init_params(key, input_size):
    """Deterministic init mimicking nn.Linear default (uniform(-1/sqrt(fan_in), 1/sqrt(fan_in)))."""
    dims = [(input_size, 256), (256, 256), (256, 784)]
    params = {}
    for idx, (fan_in, fan_out) in enumerate(dims, start=1):
        key, kw, kb = jax.random.split(key, 3)
        bound = 1.0 / jnp.sqrt(fan_in)
        params[f"w{idx}"] = jax.random.uniform(
            kw, (fan_in, fan_out), jnp.float32, -bound, bound)
        params[f"b{idx}"] = jax.random.uniform(
            kb, (1, fan_out), jnp.float32, -bound, bound)
    return params


def reference_forward(x, params, compute_dtype=jnp.float32):
    """Pure-JAX reference, optionally mirroring the bf16-operand / f32-accumulate path."""
    cdt = compute_dtype
    h = jnp.dot(x.astype(cdt), params["w1"].astype(cdt),
                preferred_element_type=jnp.float32) + params["b1"]
    h = jnp.maximum(h, 0.0)
    h = jnp.dot(h.astype(cdt), params["w2"].astype(cdt),
                preferred_element_type=jnp.float32) + params["b2"]
    h = jnp.maximum(h, 0.0)
    h = jnp.dot(h.astype(cdt), params["w3"].astype(cdt),
                preferred_element_type=jnp.float32) + params["b3"]
    return jnp.tanh(h)


if __name__ == "__main__":
    key = jax.random.PRNGKey(0)
    input_size = 32   # latent dim for the generator
    batch = 8

    k_params, k_x, k_x2 = jax.random.split(key, 3)
    params = init_params(k_params, input_size)
    x = jax.random.normal(k_x, (batch, input_size), jnp.float32)

    # 1) f32 path: matches the f32 reference (same math as the PyTorch module).
    out_f32 = jax.block_until_ready(
        generator_forward(x, params, compute_dtype=jnp.float32, out_dtype=jnp.float32))
    ref_f32 = reference_forward(x, params, jnp.float32)
    assert out_f32.shape == (batch, 784)
    assert out_f32.dtype == jnp.float32
    assert jnp.allclose(out_f32, ref_f32, atol=1e-5, rtol=1e-5)

    # 2) bf16-operand path (default, faster: bf16 MXU operands, bf16 output/store).
    out_bf16 = jax.block_until_ready(generator_forward(x, params))
    ref_bf16 = reference_forward(x, params, jnp.bfloat16)
    assert out_bf16.shape == (batch, 784)
    assert jnp.allclose(out_bf16.astype(jnp.float32), ref_bf16, atol=2e-2, rtol=0)

    # 3) Ragged batch (not a multiple of the tile): exercises cdiv grid + masked
    #    last-block store and the >=2-step split for v7x megacore.
    batch2 = 260
    x2 = jax.random.normal(k_x2, (batch2, input_size), jnp.float32)
    out2 = jax.block_until_ready(generator_forward(x2, params))
    ref2 = reference_forward(x2, params, jnp.bfloat16)
    assert out2.shape == (batch2, 784)
    assert jnp.allclose(out2.astype(jnp.float32), ref2, atol=2e-2, rtol=0)

    print("KERNEL_OK")
</pallas_src>

<mosaic_0001>
module attributes {stable_mosaic.version = 11 : i64} {
  func.func @_generator_kernel(%arg0: i32, %arg1: memref<8x32xf32, #tpu.memory_space<vmem>>, %arg2: memref<32x256xf32, #tpu.memory_space<vmem>>, %arg3: memref<1x256xf32, #tpu.memory_space<vmem>>, %arg4: memref<256x256xf32, #tpu.memory_space<vmem>>, %arg5: memref<1x256xf32, #tpu.memory_space<vmem>>, %arg6: memref<256x784xf32, #tpu.memory_space<vmem>>, %arg7: memref<1x784xf32, #tpu.memory_space<vmem>>, %arg8: memref<8x784xf32, #tpu.memory_space<vmem>>) attributes {dimension_semantics = [#tpu.dimension_semantics<parallel>], iteration_bounds = array<i64: 1>, scalar_prefetch = 0 : i64, scratch_operands = 0 : i64, tpu.core_type = #tpu.core_type<tc>, window_params = [{transform_indices = @transform_0, window_bounds = array<i64: 8, 32>}, {pipeline_mode = #tpu.pipeline_mode<synchronous>, transform_indices = @transform_1, window_bounds = array<i64: 32, 256>}, {pipeline_mode = #tpu.pipeline_mode<synchronous>, transform_indices = @transform_2, window_bounds = array<i64: 1, 256>}, {pipeline_mode = #tpu.pipeline_mode<synchronous>, transform_indices = @transform_3, window_bounds = array<i64: 256, 256>}, {pipeline_mode = #tpu.pipeline_mode<synchronous>, transform_indices = @transform_4, window_bounds = array<i64: 1, 256>}, {pipeline_mode = #tpu.pipeline_mode<synchronous>, transform_indices = @transform_5, window_bounds = array<i64: 256, 784>}, {pipeline_mode = #tpu.pipeline_mode<synchronous>, transform_indices = @transform_6, window_bounds = array<i64: 1, 784>}, {transform_indices = @transform_7, window_bounds = array<i64: 8, 784>}]} {
    %c0 = arith.constant 0 : index
    %c0_0 = arith.constant 0 : index
    %0 = vector.load %arg1[%c0, %c0_0] : memref<8x32xf32, #tpu.memory_space<vmem>>, vector<8x32xf32>
    %c0_1 = arith.constant 0 : index
    %c0_2 = arith.constant 0 : index
    %1 = vector.load %arg2[%c0_1, %c0_2] : memref<32x256xf32, #tpu.memory_space<vmem>>, vector<32x256xf32>
    %cst = arith.constant dense<0.000000e+00> : vector<8x256xf32>
    %2 = tpu.matmul %0, %1, %cst {dimension_numbers = #tpu.dot_dimension_numbers<[1], [0], [0], [1], [0, 0, 1, 1], [], []>} : vector<8x32xf32>, vector<32x256xf32>, vector<8x256xf32> -> vector<8x256xf32>
    %c0_3 = arith.constant 0 : index
    %c0_4 = arith.constant 0 : index
    %3 = vector.load %arg3[%c0_3, %c0_4] : memref<1x256xf32, #tpu.memory_space<vmem>>, vector<1x256xf32>
    %4 = vector.broadcast %3 : vector<1x256xf32> to vector<8x256xf32>
    %5 = arith.addf %2, %4 : vector<8x256xf32>
    %cst_5 = arith.constant 0.000000e+00 : f32
    %6 = vector.broadcast %cst_5 : f32 to vector<8x256xf32>
    %7 = arith.maximumf %5, %6 : vector<8x256xf32>
    %c0_6 = arith.constant 0 : index
    %c0_7 = arith.constant 0 : index
    %8 = vector.load %arg4[%c0_6, %c0_7] : memref<256x256xf32, #tpu.memory_space<vmem>>, vector<256x256xf32>
    %cst_8 = arith.constant dense<0.000000e+00> : vector<8x256xf32>
    %9 = tpu.matmul %7, %8, %cst_8 {dimension_numbers = #tpu.dot_dimension_numbers<[1], [0], [0], [1], [0, 0, 1, 1], [], []>} : vector<8x256xf32>, vector<256x256xf32>, vector<8x256xf32> -> vector<8x256xf32>
    %c0_9 = arith.constant 0 : index
    %c0_10 = arith.constant 0 : index
    %10 = vector.load %arg5[%c0_9, %c0_10] : memref<1x256xf32, #tpu.memory_space<vmem>>, vector<1x256xf32>
    %11 = vector.broadcast %10 : vector<1x256xf32> to vector<8x256xf32>
    %12 = arith.addf %9, %11 : vector<8x256xf32>
    %cst_11 = arith.constant 0.000000e+00 : f32
    %13 = vector.broadcast %cst_11 : f32 to vector<8x256xf32>
    %14 = arith.maximumf %12, %13 : vector<8x256xf32>
    %c0_12 = arith.constant 0 : index
    %c0_13 = arith.constant 0 : index
    %15 = vector.load %arg6[%c0_12, %c0_13] : memref<256x784xf32, #tpu.memory_space<vmem>>, vector<256x784xf32>
    %cst_14 = arith.constant dense<0.000000e+00> : vector<8x784xf32>
    %16 = tpu.matmul %14, %15, %cst_14 {dimension_numbers = #tpu.dot_dimension_numbers<[1], [0], [0], [1], [0, 0, 1, 1], [], []>} : vector<8x256xf32>, vector<256x784xf32>, vector<8x784xf32> -> vector<8x784xf32>
    %c0_15 = arith.constant 0 : index
    %c0_16 = arith.constant 0 : index
    %17 = vector.load %arg7[%c0_15, %c0_16] : memref<1x784xf32, #tpu.memory_space<vmem>>, vector<1x784xf32>
    %18 = vector.broadcast %17 : vector<1x784xf32> to vector<8x784xf32>
    %19 = arith.addf %16, %18 : vector<8x784xf32>
    %20 = math.tanh %19 : vector<8x784xf32>
    %c0_17 = arith.constant 0 : index
    %c0_18 = arith.constant 0 : index
    %21 = vector.load %arg8[%c0_17, %c0_18] : memref<8x784xf32, #tpu.memory_space<vmem>>, vector<8x784xf32>
    tpu.vector_store %arg8[%c0_17, %c0_18], %20 {strides = array<i32>} : memref<8x784xf32, #tpu.memory_space<vmem>>, vector<8x784xf32>,
    return
  }
  func.func @transform_0(%arg0: i32) -> (i32, i32) {
    %c0_i32 = arith.constant 0 : i32
    %c0_i32_0 = arith.constant 0 : i32
    return %arg0, %c0_i32 : i32, i32
  }
  func.func @transform_1(%arg0: i32) -> (i32, i32) {
    %c0_i32 = arith.constant 0 : i32
    %c0_i32_0 = arith.constant 0 : i32
    %c0_i32_1 = arith.constant 0 : i32
    return %c0_i32, %c0_i32_0 : i32, i32
  }
  func.func @transform_2(%arg0: i32) -> (i32, i32) {
    %c0_i32 = arith.constant 0 : i32
    %c0_i32_0 = arith.constant 0 : i32
    %c0_i32_1 = arith.constant 0 : i32
    return %c0_i32, %c0_i32_0 : i32, i32
  }
  func.func @transform_3(%arg0: i32) -> (i32, i32) {
    %c0_i32 = arith.constant 0 : i32
    %c0_i32_0 = arith.constant 0 : i32
    %c0_i32_1 = arith.constant 0 : i32
    return %c0_i32, %c0_i32_0 : i32, i32
  }
  func.func @transform_4(%arg0: i32) -> (i32, i32) {
    %c0_i32 = arith.constant 0 : i32
    %c0_i32_0 = arith.constant 0 : i32
    %c0_i32_1 = arith.constant 0 : i32
    return %c0_i32, %c0_i32_0 : i32, i32
  }
  func.func @transform_5(%arg0: i32) -> (i32, i32) {
    %c0_i32 = arith.constant 0 : i32
    %c0_i32_0 = arith.constant 0 : i32
    %c0_i32_1 = arith.constant 0 : i32
    return %c0_i32, %c0_i32_0 : i32, i32
  }
  func.func @transform_6(%arg0: i32) -> (i32, i32) {
    %c0_i32 = arith.constant 0 : i32
    %c0_i32_0 = arith.constant 0 : i32
    %c0_i32_1 = arith.constant 0 : i32
    return %c0_i32, %c0_i32_0 : i32, i32
  }
  func.func @transform_7(%arg0: i32) -> (i32, i32) {
    %c0_i32 = arith.constant 0 : i32
    %c0_i32_0 = arith.constant 0 : i32
    return %arg0, %c0_i32 : i32, i32
  }
}

</mosaic_0001>

<bundles_post_ra>
// kernel: tpu_custom_call.1
= control target key start
LH: loop header
LB: loop body
LE: loop exit
PB: predicated region body
PF: predicated region fallthrough
CT: control target
= control target key end

     0   :  { %v1219_v7 = vmov 0.0   ;;  %vm48_vm0 = vcmask 261120   ;;  %s2198_s0 = inlined_call_operand.vmem [shape: f32[8,32], index: 0, kind: input, shape index: {}]   ;;  %s2199_s1 = inlined_call_operand.vmem [shape: f32[32,256], index: 1, kind: input, shape index: {}]   ;;  %s2200_s2 = inlined_call_operand.vmem [shape: f32[1,256], index: 2, kind: input, shape index: {}]   ;;  %s2201_s3 = inlined_call_operand.vmem [shape: f32[256,256], index: 3, kind: input, shape index: {}]   ;;  %s2202_s4 = inlined_call_operand.vmem [shape: f32[1,256], index: 4, kind: input, shape index: {}]   ;;  %s2203_s5 = inlined_call_operand.vmem [shape: f32[256,784], index: 5, kind: input, shape index: {}]   ;;  %s2204_s6 = inlined_call_operand.vmem [shape: f32[1,784], index: 6, kind: input, shape index: {}]   ;;  %s2205_s7 = inlined_call_operand.hbm [shape: f32[8,784], index: 7, kind: output, shape index: {}]  }
   0x1   :  { %v29_v0 = vld [vmem:[%s2199_s1 + $0x8] sm:$0xff]  ;;  %v31_v1 = vld [vmem:[%s2199_s1 + $0x18] sm:$0xff]  ;;  %v28_v2 = vld [vmem:[%s2199_s1] sm:$0xff]  ;;  %116 = vmatprep.mubr.f32.mxu0 %v1219_v7 }
   0x2   :  { %v883_v3 = vpack.c.bf16 %v31_v1, %v29_v0  ;;  %v30_v4 = vld [vmem:[%s2199_s1 + $0x10] sm:$0xff]  ;;  %v33_v5 = vld [vmem:[%s2199_s1 + $0x28] sm:$0xff]  ;;  %v35_v6 = vld [vmem:[%s2199_s1 + $0x38] sm:$0xff] }
   0x3   :  { %v885_v8 = vpack.c.bf16 %v30_v4, %v28_v2  ;;  %v887_v9 = vpack.c.bf16 %v35_v6, %v33_v5  ;;  %v32_v10 = vld [vmem:[%s2199_s1 + $0x20] sm:$0xff]  ;;  %v34_v11 = vld [vmem:[%s2199_s1 + $0x30] sm:$0xff]  ;;  %v126_v12 = vld [vmem:[%s2201_s3 + $0x8] sm:$0xff] }
   0x4   :  { %884 = vmatprep.subr.bf16.mxu0 %v883_v3  ;;  %v128_v13 = vld [vmem:[%s2201_s3 + $0x18] sm:$0xff]  ;;  %v125_v14 = vld [vmem:[%s2201_s3] sm:$0xff]  ;;  %v889_v15 = vpack.c.bf16 %v34_v11, %v32_v10  ;;  %v127_v17 = vld [vmem:[%s2201_s3 + $0x10] sm:$0xff] }
   0x5   :  { %886 = vmatpush1.bf16.msra.mxu0 %v885_v8  ;;  %v891_v16 = vpack.c.bf16 %v128_v13, %v126_v12  ;;  %v130_v18 = vld [vmem:[%s2201_s3 + $0x28] sm:$0xff]  ;;  %v132_v19 = vld [vmem:[%s2201_s3 + $0x38] sm:$0xff]  ;;  %v893_v20 = vpack.c.bf16 %v127_v17, %v125_v14  ;;  %v129_v22 = vld [vmem:[%s2201_s3 + $0x20] sm:$0xff] }
   0x6   :  { %888 = vmatprep.subr.bf16.mxu0 %v887_v9  ;;  %v895_v21 = vpack.c.bf16 %v132_v19, %v130_v18  ;;  %v131_v23 = vld [vmem:[%s2201_s3 + $0x30] sm:$0xff]  ;;  %v134_v24 = vld [vmem:[%s2201_s3 + $0x48] sm:$0xff]  ;;  %v136_v25 = vld [vmem:[%s2201_s3 + $0x58] sm:$0xff] }
   0x7   :  { %892 = vmatprep.subr.bf16.mxu1 %v891_v16  ;;  %v897_v26 = vpack.c.bf16 %v131_v23, %v129_v22  ;;  %v27_v27 = vld [vmem:[%s2198_s0] sm:$0xff]  ;;  %v899_v28 = vpack.c.bf16 %v136_v25, %v134_v24  ;;  %v135_v30 = vld [vmem:[%s2201_s3 + $0x50] sm:$0xff]  ;;  %v138_v31 = vld [vmem:[%s2201_s3 + $0x68] sm:$0xff] }
   0x8   :  { %894 = vmatpush1.bf16.msra.mxu1 %v893_v20  ;;  %v133_v29 = vld [vmem:[%s2201_s3 + $0x40] sm:$0xff]  ;;  %v140_v32 = vld [vmem:[%s2201_s3 + $0x78] sm:$0xff]  ;;  %v139_v36 = vld [vmem:[%s2201_s3 + $0x70] sm:$0xff] }
   0x9   :  { %890 = vmatpush1.bf16.msra.mxu0 %v889_v15  ;;  %896 = vmatprep.subr.bf16.mxu1 %v895_v21  ;;  %v901_v33 = vpack.c.bf16 %v135_v30, %v133_v29  ;;  %v903_v34 = vpack.c.bf16 %v140_v32, %v138_v31  ;;  %v137_v35 = vld [vmem:[%s2201_s3 + $0x60] sm:$0xff]  ;;  %v142_v37 = vld [vmem:[%s2201_s3 + $0x88] sm:$0xff]  ;;  %v144_v38 = vld [vmem:[%s2201_s3 + $0x98] sm:$0xff] }
   0xa   :  { %v905_v39 = vpack.c.bf16 %v139_v36, %v137_v35  ;;  %v907_v40 = vpack.c.bf16 %v144_v38, %v142_v37  ;;  %v141_v41 = vld [vmem:[%s2201_s3 + $0x80] sm:$0xff]  ;;  %v143_v42 = vld [vmem:[%s2201_s3 + $0x90] sm:$0xff]  ;;  %v146_v43 = vld [vmem:[%s2201_s3 + $0xa8] sm:$0xff] }
   0xb   :  { %v148_v44 = vld [vmem:[%s2201_s3 + $0xb8] sm:$0xff]  ;;  %v909_v45 = vpack.c.bf16 %v143_v42, %v141_v41  ;;  %v145_v47 = vld [vmem:[%s2201_s3 + $0xa0] sm:$0xff]  ;;  %v147_v48 = vld [vmem:[%s2201_s3 + $0xb0] sm:$0xff] }
   0xc   :  { %847 = vmatmul.mubr.msk.f32.vlgmr.msra.gmra.mrb[0].mxu0 %vm48_vm0, %v27_v27  ;;  %898 = vmatpush1.bf16.msra.mxu1 %v897_v26  ;;  %v911_v46 = vpack.c.bf16 %v148_v44, %v146_v43  ;;  %v150_v49 = vld [vmem:[%s2201_s3 + $0xc8] sm:$0xff]  ;;  %v152_v50 = vld [vmem:[%s2201_s3 + $0xd8] sm:$0xff] }
   0xd   :  { %900 = vmatprep.subr.bf16.mxu1 %v899_v28 }
  0x10   :  { %902 = vmatpush1.bf16.msra.mxu1 %v901_v33 }
  0x11   :  { %904 = vmatprep.subr.bf16.mxu1 %v903_v34 }
  0x14   :  { %906 = vmatpush1.bf16.msra.mxu1 %v905_v39 }
  0x15   :  { %908 = vmatprep.subr.bf16.mxu1 %v907_v40 }
  0x16   :  { %12 = vsyncpa [#allocation3], 0  ;;  %v913_v51 = vpack.c.bf16 %v147_v48, %v145_v47  ;;  %v915_v52 = vpack.c.bf16 %v152_v50, %v150_v49  ;;  %v149_v53 = vld [vmem:[%s2201_s3 + $0xc0] sm:$0xff]  ;;  %v151_v54 = vld [vmem:[%s2201_s3 + $0xd0] sm:$0xff]  ;;  %vm831_vm1 = vcmask 130048  }
  0x17   :  { %v154_v55 = vld [vmem:[%s2201_s3 + $0xe8] sm:$0xff]  ;;  %v156_v56 = vld [vmem:[%s2201_s3 + $0xf8] sm:$0xff]  ;;  %v917_v57 = vpack.c.bf16 %v151_v54, %v149_v53  ;;  %v153_v59 = vld [vmem:[%s2201_s3 + $0xe0] sm:$0xff] }
  0x18   :  { %910 = vmatpush1.bf16.msra.mxu1 %v909_v45  ;;  %v919_v58 = vpack.c.bf16 %v156_v56, %v154_v55  ;;  %v155_v60 = vld [vmem:[%s2201_s3 + $0xf0] sm:$0xff]  ;;  %v158_v61 = vld [vmem:[%s2201_s3 + $0x108] sm:$0xff]  ;;  %v160_v62 = vld [vmem:[%s2201_s3 + $0x118] sm:$0xff] }
  0x19   :  { %912 = vmatprep.subr.bf16.mxu1 %v911_v46  ;;  %v921_v63 = vpack.c.bf16 %v155_v60, %v153_v59  ;;  %v923_v0 = vpack.c.bf16 %v160_v62, %v158_v61  ;;  %v157_v1 = vld [vmem:[%s2201_s3 + $0x100] sm:$0xff]  ;;  %v159_v2 = vld [vmem:[%s2201_s3 + $0x110] sm:$0xff]  ;;  %v162_v3 = vld [vmem:[%s2201_s3 + $0x128] sm:$0xff] }
  0x1a   :  { %v164_v4 = vld [vmem:[%s2201_s3 + $0x138] sm:$0xff]  ;;  %v925_v5 = vpack.c.bf16 %v159_v2, %v157_v1  ;;  %v161_v7 = vld [vmem:[%s2201_s3 + $0x120] sm:$0xff]  ;;  %v163_v8 = vld [vmem:[%s2201_s3 + $0x130] sm:$0xff] }
  0x1b   :  { %v927_v6 = vpack.c.bf16 %v164_v4, %v162_v3  ;;  %v166_v9 = vld [vmem:[%s2201_s3 + $0x148] sm:$0xff]  ;;  %v168_v10 = vld [vmem:[%s2201_s3 + $0x158] sm:$0xff]  ;;  %v929_v11 = vpack.c.bf16 %v163_v8, %v161_v7  ;;  %v165_v13 = vld [vmem:[%s2201_s3 + $0x140] sm:$0xff] }
  0x1c   :  { %914 = vmatpush1.bf16.msra.mxu1 %v913_v51  ;;  %v931_v12 = vpack.c.bf16 %v168_v10, %v166_v9  ;;  %v167_v14 = vld [vmem:[%s2201_s3 + $0x150] sm:$0xff]  ;;  %v170_v15 = vld [vmem:[%s2201_s3 + $0x168] sm:$0xff]  ;;  %v172_v16 = vld [vmem:[%s2201_s3 + $0x178] sm:$0xff] }
  0x1d   :  { %916 = vmatprep.subr.bf16.mxu1 %v915_v52  ;;  %v933_v17 = vpack.c.bf16 %v167_v14, %v165_v13  ;;  %v935_v18 = vpack.c.bf16 %v172_v16, %v170_v15  ;;  %v169_v19 = vld [vmem:[%s2201_s3 + $0x160] sm:$0xff]  ;;  %v171_v20 = vld [vmem:[%s2201_s3 + $0x170] sm:$0xff]  ;;  %v174_v21 = vld [vmem:[%s2201_s3 + $0x188] sm:$0xff] }
  0x1e   :  { %v176_v22 = vld [vmem:[%s2201_s3 + $0x198] sm:$0xff]  ;;  %v937_v23 = vpack.c.bf16 %v171_v20, %v169_v19  ;;  %v173_v25 = vld [vmem:[%s2201_s3 + $0x180] sm:$0xff]  ;;  %v175_v26 = vld [vmem:[%s2201_s3 + $0x190] sm:$0xff] }
  0x1f   :  { %v939_v24 = vpack.c.bf16 %v176_v22, %v174_v21  ;;  %v178_v27 = vld [vmem:[%s2201_s3 + $0x1a8] sm:$0xff]  ;;  %v180_v28 = vld [vmem:[%s2201_s3 + $0x1b8] sm:$0xff]  ;;  %v941_v29 = vpack.c.bf16 %v175_v26, %v173_v25  ;;  %v177_v31 = vld [vmem:[%s2201_s3 + $0x1a0] sm:$0xff] }
  0x20   :  { %918 = vmatpush1.bf16.msra.mxu1 %v917_v57  ;;  %v943_v30 = vpack.c.bf16 %v180_v28, %v178_v27  ;;  %v179_v32 = vld [vmem:[%s2201_s3 + $0x1b0] sm:$0xff]  ;;  %v182_v33 = vld [vmem:[%s2201_s3 + $0x1c8] sm:$0xff]  ;;  %v184_v34 = vld [vmem:[%s2201_s3 + $0x1d8] sm:$0xff] }
  0x21   :  { %920 = vmatprep.subr.bf16.mxu1 %v919_v58  ;;  %v945_v35 = vpack.c.bf16 %v179_v32, %v177_v31  ;;  %v947_v36 = vpack.c.bf16 %v184_v34, %v182_v33  ;;  %v181_v37 = vld [vmem:[%s2201_s3 + $0x1c0] sm:$0xff]  ;;  %v183_v38 = vld [vmem:[%s2201_s3 + $0x1d0] sm:$0xff]  ;;  %v186_v40 = vld [vmem:[%s2201_s3 + $0x1e8] sm:$0xff] }
  0x22   :  { %v949_v39 = vpack.c.bf16 %v183_v38, %v181_v37  ;;  %v188_v41 = vld [vmem:[%s2201_s3 + $0x1f8] sm:$0xff]  ;;  %v185_v43 = vld [vmem:[%s2201_s3 + $0x1e0] sm:$0xff]  ;;  %v187_v44 = vld [vmem:[%s2201_s3 + $0x1f0] sm:$0xff] }
  0x23   :  { %v951_v42 = vpack.c.bf16 %v188_v41, %v186_v40  ;;  %v953_v45 = vpack.c.bf16 %v187_v44, %v185_v43  ;;  %v275_v46 = vld [vmem:[%s2203_s5 + $0x8] sm:$0xff]  ;;  %v282_v47 = vld [vmem:[%s2203_s5 + $0x40] sm:$0xff]  ;;  %v277_v48 = vld [vmem:[%s2203_s5 + $0x18] sm:$0xff] }
  0x24   :  { %922 = vmatpush1.bf16.msra.mxu1 %v921_v63  ;;  %v955_v49 = vpack.c.bf16 %v282_v47, %v275_v46  ;;  %v284_v50 = vld [vmem:[%s2203_s5 + $0x50] sm:$0xff]  ;;  %v274_v51 = vld [vmem:[%s2203_s5] sm:$0xff]  ;;  %v281_v52 = vld [vmem:[%s2203_s5 + $0x38] sm:$0xff] }
  0x25   :  { %924 = vmatprep.subr.bf16.mxu1 %v923_v0  ;;  %v1019_v53 = vpack.c.bf16 %v284_v50, %v277_v48  ;;  %v957_v54 = vpack.c.bf16 %v281_v52, %v274_v51  ;;  %v289_v55 = vld [vmem:[%s2203_s5 + $0x78] sm:$0xff]  ;;  %v296_v56 = vld [vmem:[%s2203_s5 + $0xb0] sm:$0xff]  ;;  %v295_v59 = vld [vmem:[%s2203_s5 + $0xa8] sm:$0xff] }
  0x26   :  { %956 = vmatprep.subr.bf16.mxu0 %v955_v49  ;;  %v959_v57 = vpack.c.bf16 %v296_v56, %v289_v55  ;;  %v288_v58 = vld [vmem:[%s2203_s5 + $0x70] sm:$0xff]  ;;  %v303_v61 = vld [vmem:[%s2203_s5 + $0xe8] sm:$0xff]  ;;  %v310_v62 = vld [vmem:[%s2203_s5 + $0x120] sm:$0xff] }
  0x27   :  { %958 = vmatpush1.bf16.msra.mxu0 %v957_v54  ;;  %v961_v60 = vpack.c.bf16 %v295_v59, %v288_v58  ;;  %v963_v63 = vpack.c.bf16 %v310_v62, %v303_v61  ;;  %v302_v0 = vld [vmem:[%s2203_s5 + $0xe0] sm:$0xff]  ;;  %v309_v1 = vld [vmem:[%s2203_s5 + $0x118] sm:$0xff]  ;;  %v324_v4 = vld [vmem:[%s2203_s5 + $0x190] sm:$0xff] }
  0x28   :  { %926 = vmatpush1.bf16.msra.mxu1 %v925_v5  ;;  %960 = vmatprep.subr.bf16.mxu0 %v959_v57  ;;  %v965_v2 = vpack.c.bf16 %v309_v1, %v302_v0  ;;  %v317_v3 = vld [vmem:[%s2203_s5 + $0x158] sm:$0xff]  ;;  %v323_v7 = vld [vmem:[%s2203_s5 + $0x188] sm:$0xff]  ;;  %v338_v10 = vld [vmem:[%s2203_s5 + $0x200] sm:$0xff] }
  0x29   :  { %928 = vmatprep.subr.bf16.mxu1 %v927_v6  ;;  %v967_v5 = vpack.c.bf16 %v324_v4, %v317_v3  ;;  %v316_v6 = vld [vmem:[%s2203_s5 + $0x150] sm:$0xff]  ;;  %v331_v9 = vld [vmem:[%s2203_s5 + $0x1c8] sm:$0xff]  ;;  %v337_v13 = vld [vmem:[%s2203_s5 + $0x1f8] sm:$0xff] }
  0x2a   :  { %v969_v8 = vpack.c.bf16 %v323_v7, %v316_v6  ;;  %v345_v15 = vld [vmem:[%s2203_s5 + $0x238] sm:$0xff]  ;;  %v352_v16 = vld [vmem:[%s2203_s5 + $0x270] sm:$0xff]  ;;  %v351_v19 = vld [vmem:[%s2203_s5 + $0x268] sm:$0xff] }
  0x2b   :  { %962 = vmatpush1.bf16.msra.mxu0 %v961_v60  ;;  %v359_v21 = vld [vmem:[%s2203_s5 + $0x2a8] sm:$0xff]  ;;  %v366_v22 = vld [vmem:[%s2203_s5 + $0x2e0] sm:$0xff]  ;;  %v365_v25 = vld [vmem:[%s2203_s5 + $0x2d8] sm:$0xff] }
  0x2c   :  { %930 = vmatpush1.bf16.msra.mxu1 %v929_v11  ;;  %964 = vmatprep.subr.bf16.mxu0 %v963_v63  ;;  %v971_v11 = vpack.c.bf16 %v338_v10, %v331_v9  ;;  %v373_v27 = vld [vmem:[%s2203_s5 + $0x318] sm:$0xff]  ;;  %v380_v28 = vld [vmem:[%s2203_s5 + $0x350] sm:$0xff]  ;;  %v379_v31 = vld [vmem:[%s2203_s5 + $0x348] sm:$0xff] }
  0x2d   :  { %932 = vmatprep.subr.bf16.mxu1 %v931_v12  ;;  %v330_v12 = vld [vmem:[%s2203_s5 + $0x1c0] sm:$0xff]  ;;  %v387_v33 = vld [vmem:[%s2203_s5 + $0x388] sm:$0xff]  ;;  %v393_v37 = vld [vmem:[%s2203_s5 + $0x3b8] sm:$0xff] }
  0x2e   :  { %v973_v14 = vpack.c.bf16 %v337_v13, %v330_v12  ;;  %v394_v34 = vld [vmem:[%s2203_s5 + $0x3c0] sm:$0xff]  ;;  %v408_v40 = vld [vmem:[%s2203_s5 + $0x430] sm:$0xff]  ;;  %v407_v43 = vld [vmem:[%s2203_s5 + $0x428] sm:$0xff] }
  0x2f   :  { %966 = vmatpush1.bf16.msra.mxu0 %v965_v2  ;;  %v422_v46 = vld [vmem:[%s2203_s5 + $0x4a0] sm:$0xff]  ;;  %v421_v49 = vld [vmem:[%s2203_s5 + $0x498] sm:$0xff]  ;;  %v436_v52 = vld [vmem:[%s2203_s5 + $0x510] sm:$0xff] }
  0x30   :  { %934 = vmatpush1.bf16.msra.mxu1 %v933_v17  ;;  %968 = vmatprep.subr.bf16.mxu0 %v967_v5  ;;  %v975_v17 = vpack.c.bf16 %v352_v16, %v345_v15  ;;  %v414_v48 = vld [vmem:[%s2203_s5 + $0x460] sm:$0xff]  ;;  %v429_v51 = vld [vmem:[%s2203_s5 + $0x4d8] sm:$0xff]  ;;  %v428_v54 = vld [vmem:[%s2203_s5 + $0x4d0] sm:$0xff] }
  0x31   :  { %936 = vmatprep.subr.bf16.mxu1 %v935_v18  ;;  %v344_v18 = vld [vmem:[%s2203_s5 + $0x230] sm:$0xff]  ;;  %v997_v50 = vpack.c.bf16 %v421_v49, %v414_v48  ;;  %v435_v55 = vld [vmem:[%s2203_s5 + $0x508] sm:$0xff]  ;;  %v450_v58 = vld [vmem:[%s2203_s5 + $0x580] sm:$0xff] }
  0x32   :  { %v977_v20 = vpack.c.bf16 %v351_v19, %v344_v18  ;;  %v1001_v56 = vpack.c.bf16 %v435_v55, %v428_v54  ;;  %v443_v57 = vld [vmem:[%s2203_s5 + $0x548] sm:$0xff]  ;;  %v442_v60 = vld [vmem:[%s2203_s5 + $0x540] sm:$0xff]  ;;  %v449_v61 = vld [vmem:[%s2203_s5 + $0x578] sm:$0xff] }
  0x33   :  { %970 = vmatpush1.bf16.msra.mxu0 %v969_v8  ;;  %v1003_v59 = vpack.c.bf16 %v450_v58, %v443_v57  ;;  %v1005_v62 = vpack.c.bf16 %v449_v61, %v442_v60  ;;  %v457_v63 = vld [vmem:[%s2203_s5 + $0x5b8] sm:$0xff]  ;;  %v464_v0 = vld [vmem:[%s2203_s5 + $0x5f0] sm:$0xff]  ;;  %v463_v3 = vld [vmem:[%s2203_s5 + $0x5e8] sm:$0xff] }
  0x34   :  { %938 = vmatpush1.bf16.msra.mxu1 %v937_v23  ;;  %972 = vmatprep.subr.bf16.mxu0 %v971_v11  ;;  %v979_v23 = vpack.c.bf16 %v366_v22, %v359_v21  ;;  %v1007_v1 = vpack.c.bf16 %v464_v0, %v457_v63  ;;  %v456_v2 = vld [vmem:[%s2203_s5 + $0x5b0] sm:$0xff]  ;;  %v471_v5 = vld [vmem:[%s2203_s5 + $0x628] sm:$0xff]  ;;  %v478_v6 = vld [vmem:[%s2203_s5 + $0x660] sm:$0xff]  ;;  %v38_v11 = vlaneseq }
  0x35   :  { %940 = vmatprep.subr.bf16.mxu1 %v939_v24  ;;  %v358_v24 = vld [vmem:[%s2203_s5 + $0x2a0] sm:$0xff]  ;;  %v1009_v4 = vpack.c.bf16 %v463_v3, %v456_v2  ;;  %v1011_v7 = vpack.c.bf16 %v478_v6, %v471_v5  ;;  %v477_v9 = vld [vmem:[%s2203_s5 + $0x658] sm:$0xff]  ;;  %v276_v21 = vld [vmem:[%s2203_s5 + $0x10] sm:$0xff] }
  0x36   :  { %v981_v26 = vpack.c.bf16 %v365_v25, %v358_v24  ;;  %v470_v8 = vld [vmem:[%s2203_s5 + $0x620] sm:$0xff]  ;;  %v1666_v12 = vshrl.u32 %v38_v11, 7  ;;  %v283_v22 = vld [vmem:[%s2203_s5 + $0x48] sm:$0xff]  ;;  %v332_v48 = vld [vmem:[%s2203_s5 + $0x1d0] sm:$0xff] }
  0x37   :  { %974 = vmatpush1.bf16.msra.mxu0 %v973_v14  ;;  %v1013_v10 = vpack.c.bf16 %v477_v9, %v470_v8  ;;  %v36_v14 = vld [vmem:[%s2200_s2] sm:$0x3]  ;;  %v291_v24 = vld [vmem:[%s2203_s5 + $0x88] sm:$0xff]  ;;  %v353_v55 = vld [vmem:[%s2203_s5 + $0x278] sm:$0xff] }
  0x38   :  { %942 = vmatpush1.bf16.msra.mxu1 %v941_v29  ;;  %976 = vmatprep.subr.bf16.mxu0 %v975_v17  ;;  %v983_v29 = vpack.c.bf16 %v380_v28, %v373_v27  ;;  %v1669_v13 = vsub.s32 0, %v1666_v12  ;;  %v1675_v15 = vsub.s32 1, %v1666_v12  ;;  %v298_v25 = vld [vmem:[%s2203_s5 + $0xc0] sm:$0xff]  ;;  %v1021_v27 = vpack.c.bf16 %v283_v22, %v276_v21  ;;  %v339_v49 = vld [vmem:[%s2203_s5 + $0x208] sm:$0xff]  ;;  %v368_v57 = vld [vmem:[%s2203_s5 + $0x2f0] sm:$0xff] }
  0x39   :  { %944 = vmatprep.subr.bf16.mxu1 %v943_v30  ;;  %v372_v30 = vld [vmem:[%s2203_s5 + $0x310] sm:$0xff]  ;;  %v346_v54 = vld [vmem:[%s2203_s5 + $0x240] sm:$0xff]  ;;  %v367_v61 = vld [vmem:[%s2203_s5 + $0x2e8] sm:$0xff] }
  0x3a   :  { %v985_v32 = vpack.c.bf16 %v379_v31, %v372_v30  ;;  %v41_v16 = vrot.slane %v36_v14, %v1669_v13  ;;  %v45_v17 = vrot.slane %v36_v14, %v1675_v15  ;;  %v290_v30 = vld [vmem:[%s2203_s5 + $0x80] sm:$0xff]  ;;  %v297_v31 = vld [vmem:[%s2203_s5 + $0xb8] sm:$0xff]  ;;  %v1041_v58 = vpack.c.bf16 %v353_v55, %v346_v54  ;;  %v360_v60 = vld [vmem:[%s2203_s5 + $0x2b0] sm:$0xff] }
  0x3b   :  { %978 = vmatpush1.bf16.msra.mxu0 %v977_v20  ;;  %v382_v63 = vld [vmem:[%s2203_s5 + $0x360] sm:$0xff]  ;;  %v1045_v0 = vpack.c.bf16 %v367_v61, %v360_v60  ;;  %v381_v3 = vld [vmem:[%s2203_s5 + $0x358] sm:$0xff]  ;;  %v396_v5 = vld [vmem:[%s2203_s5 + $0x3d0] sm:$0xff] }
  0x3c   :  { %946 = vmatpush1.bf16.msra.mxu1 %v945_v35  ;;  %980 = vmatprep.subr.bf16.mxu0 %v979_v23  ;;  %v987_v35 = vpack.c.bf16 %v394_v34, %v387_v33  ;;  %v312_v33 = vld [vmem:[%s2203_s5 + $0x130] sm:$0xff]  ;;  %v1025_v34 = vpack.c.bf16 %v297_v31, %v290_v30  ;;  %v374_v2 = vld [vmem:[%s2203_s5 + $0x320] sm:$0xff]  ;;  %v395_v9 = vld [vmem:[%s2203_s5 + $0x3c8] sm:$0xff] }
  0x3d   :  { %948 = vmatprep.subr.bf16.mxu1 %v947_v36  ;;  %v386_v36 = vld [vmem:[%s2203_s5 + $0x380] sm:$0xff]  ;;  %v1049_v6 = vpack.c.bf16 %v381_v3, %v374_v2  ;;  %v388_v8 = vld [vmem:[%s2203_s5 + $0x390] sm:$0xff]  ;;  %v437_v30 = vld [vmem:[%s2203_s5 + $0x518] sm:$0xff] }
  0x3e   :  { %v989_v38 = vpack.c.bf16 %v393_v37, %v386_v36  ;;  %v304_v36 = vld [vmem:[%s2203_s5 + $0xf0] sm:$0xff]  ;;  %v311_v37 = vld [vmem:[%s2203_s5 + $0x128] sm:$0xff]  ;;  %v410_v11 = vld [vmem:[%s2203_s5 + $0x440] sm:$0xff]  ;;  %v1053_v14 = vpack.c.bf16 %v395_v9, %v388_v8 }
  0x3f   :  { %982 = vmatpush1.bf16.msra.mxu0 %v981_v26  ;;  %v445_v31 = vld [vmem:[%s2203_s5 + $0x558] sm:$0xff]  ;;  %v494_v54 = vld [vmem:[%s2203_s5 + $0x6e0] sm:$0xff]  ;;  %v484_v55 = vld [vmem:[%s2203_s5 + $0x690] sm:$0xff] }
  0x40   :  { %950 = vmatpush1.bf16.msra.mxu1 %v949_v39  ;;  %984 = vmatprep.subr.bf16.mxu0 %v983_v29  ;;  %v401_v39 = vld [vmem:[%s2203_s5 + $0x3f8] sm:$0xff]  ;;  %v1023_v29 = vpack.c.bf16 %v298_v25, %v291_v24  ;;  %v423_v24 = vld [vmem:[%s2203_s5 + $0x4a8] sm:$0xff]  ;;  %v278_v8 = vld [vmem:[%s2203_s5 + $0x20] sm:$0xff] }
  0x41   :  { %952 = vmatprep.subr.bf16.mxu1 %v951_v42  ;;  %v991_v41 = vpack.c.bf16 %v408_v40, %v401_v39  ;;  %v400_v42 = vld [vmem:[%s2203_s5 + $0x3f0] sm:$0xff]  ;;  %v326_v39 = vld [vmem:[%s2203_s5 + $0x1a0] sm:$0xff]  ;;  %v1029_v40 = vpack.c.bf16 %v311_v37, %v304_v36  ;;  %v431_v25 = vld [vmem:[%s2203_s5 + $0x4e8] sm:$0xff] }
  0x42   :  { %v993_v44 = vpack.c.bf16 %v407_v43, %v400_v42  ;;  %v318_v42 = vld [vmem:[%s2203_s5 + $0x160] sm:$0xff]  ;;  %v325_v43 = vld [vmem:[%s2203_s5 + $0x198] sm:$0xff]  ;;  %v451_v36 = vld [vmem:[%s2203_s5 + $0x588] sm:$0xff] }
  0x43   :  { %986 = vmatpush1.bf16.msra.mxu0 %v985_v32  ;;  %v305_v32 = vld [vmem:[%s2203_s5 + $0xf8] sm:$0xff]  ;;  %v459_v37 = vld [vmem:[%s2203_s5 + $0x5c8] sm:$0xff] }
  0x44   :  { %954 = vmatpush1.bf16.msra.mxu1 %v953_v45  ;;  %988 = vmatprep.subr.bf16.mxu0 %v987_v35  ;;  %v415_v45 = vld [vmem:[%s2203_s5 + $0x468] sm:$0xff]  ;;  %v1027_v35 = vpack.c.bf16 %v312_v33, %v305_v32  ;;  %v452_v32 = vld [vmem:[%s2203_s5 + $0x590] sm:$0xff]  ;;  %v493_v60 = vld [vmem:[%s2203_s5 + $0x6d8] sm:$0xff] }
  0x45   :  { %1020 = vmatprep.subr.bf16.mxu1 %v1019_v53  ;;  %v995_v47 = vpack.c.bf16 %v422_v46, %v415_v45  ;;  %v999_v53 = vpack.c.bf16 %v436_v52, %v429_v51  ;;  %v340_v45 = vld [vmem:[%s2203_s5 + $0x210] sm:$0xff]  ;;  %v1033_v46 = vpack.c.bf16 %v325_v43, %v318_v42  ;;  %v354_v51 = vld [vmem:[%s2203_s5 + $0x280] sm:$0xff]  ;;  %v1037_v52 = vpack.c.bf16 %v339_v49, %v332_v48  ;;  %v465_v42 = vld [vmem:[%s2203_s5 + $0x5f8] sm:$0xff] }
  0x46   :  { %v473_v43 = vld [vmem:[%s2203_s5 + $0x638] sm:$0xff]  ;;  %v479_v48 = vld [vmem:[%s2203_s5 + $0x668] sm:$0xff] }
  0x47   :  { %990 = vmatpush1.bf16.msra.mxu0 %v989_v38  ;;  %v319_v38 = vld [vmem:[%s2203_s5 + $0x168] sm:$0xff] }
  0x48   :  { %992 = vmatprep.subr.bf16.mxu0 %v991_v41  ;;  %v1031_v41 = vpack.c.bf16 %v326_v39, %v319_v38  ;;  %v466_v38 = vld [vmem:[%s2203_s5 + $0x600] sm:$0xff]  ;;  %v399_v2 = vld [vmem:[%s2203_s5 + $0x3e8] sm:$0xff] }
  0x4b   :  { %994 = vmatpush1.bf16.msra.mxu0 %v993_v44  ;;  %v333_v44 = vld [vmem:[%s2203_s5 + $0x1d8] sm:$0xff] }
  0x4c   :  { %996 = vmatprep.subr.bf16.mxu0 %v995_v47  ;;  %v1035_v47 = vpack.c.bf16 %v340_v45, %v333_v44  ;;  %v480_v44 = vld [vmem:[%s2203_s5 + $0x670] sm:$0xff] }
  0x4f   :  { %998 = vmatpush1.bf16.msra.mxu0 %v997_v50  ;;  %v347_v50 = vld [vmem:[%s2203_s5 + $0x248] sm:$0xff] }
  0x50   :  { %1000 = vmatprep.subr.bf16.mxu0 %v999_v53  ;;  %v1039_v53 = vpack.c.bf16 %v354_v51, %v347_v50  ;;  %v485_v50 = vld [vmem:[%s2203_s5 + $0x698] sm:$0xff]  ;;  %v492_v51 = vld [vmem:[%s2203_s5 + $0x6d0] sm:$0xff] }
  0x53   :  { %1002 = vmatpush1.bf16.msra.mxu0 %v1001_v56  ;;  %v361_v56 = vld [vmem:[%s2203_s5 + $0x2b8] sm:$0xff] }
  0x54   :  { %1004 = vmatprep.subr.bf16.mxu0 %v1003_v59  ;;  %v1043_v59 = vpack.c.bf16 %v368_v57, %v361_v56  ;;  %v491_v56 = vld [vmem:[%s2203_s5 + $0x6c8] sm:$0xff] }
  0x57   :  { %1006 = vmatpush1.bf16.msra.mxu0 %v1005_v62  ;;  %v375_v62 = vld [vmem:[%s2203_s5 + $0x328] sm:$0xff] }
  0x58   :  { %1008 = vmatprep.subr.bf16.mxu0 %v1007_v1  ;;  %v1047_v1 = vpack.c.bf16 %v382_v63, %v375_v62  ;;  %v279_v62 = vld [vmem:[%s2203_s5 + $0x28] sm:$0xff]  ;;  %v286_v63 = vld [vmem:[%s2203_s5 + $0x60] sm:$0xff] }
  0x5b   :  { %1010 = vmatpush1.bf16.msra.mxu0 %v1009_v4  ;;  %v389_v4 = vld [vmem:[%s2203_s5 + $0x398] sm:$0xff] }
  0x5c   :  { %1012 = vmatprep.subr.bf16.mxu0 %v1011_v7  ;;  %v1051_v7 = vpack.c.bf16 %v396_v5, %v389_v4  ;;  %v189_v4 = vld [vmem:[%s2202_s4] sm:$0x3] }
  0x5d   :  { %v194_v5 = vrot.slane %v189_v4, %v1669_v13 }
  0x5f   :  { %1014 = vmatpush1.bf16.msra.mxu0 %v1013_v10  ;;  %v403_v10 = vld [vmem:[%s2203_s5 + $0x408] sm:$0xff] }
  0xdf   :  { %v118_v18 = vpop.f32.mrb[0].mxu0 }
  0xe0   :  { %v119_v19 = vadd.f32 %v118_v18, %v41_v16  ;;  %v120_v20 = vpop.f32.mrb[1].mxu0  ;;  %v1055_v16 = vpack.c.bf16 %v410_v11, %v403_v10  ;;  %v409_v18 = vld [vmem:[%s2203_s5 + $0x438] sm:$0xff] }
  0xe1   :  { %v121_v23 = vadd.f32 %v120_v20, %v45_v17  ;;  %v402_v17 = vld [vmem:[%s2203_s5 + $0x400] sm:$0xff]  ;;  %v424_v20 = vld [vmem:[%s2203_s5 + $0x4b0] sm:$0xff]  ;;  %v285_v11 = vld [vmem:[%s2203_s5 + $0x58] sm:$0xff] }
  0xe2   :  { %v123_v28 = vmax.f32 %v119_v19, 0.0  ;;  %v417_v19 = vld [vmem:[%s2203_s5 + $0x478] sm:$0xff]  ;;  %v1057_v21 = vpack.c.bf16 %v409_v18, %v402_v17 }
  0xe3   :  { %v124_v26 = vmax.f32 %v121_v23, 0.0  ;;  %v1059_v22 = vpack.c.bf16 %v424_v20, %v417_v19  ;;  %v416_v23 = vld [vmem:[%s2203_s5 + $0x470] sm:$0xff]  ;;  %v293_v18 = vld [vmem:[%s2203_s5 + $0x98] sm:$0xff]  ;;  %v406_v20 = vld [vmem:[%s2203_s5 + $0x420] sm:$0xff] }
  0xe4   :  { %v300_v19 = vld [vmem:[%s2203_s5 + $0xd0] sm:$0xff] }
  0xe5   :  { %265 = vmatprep.mubr.f32.mxu1 %v124_v26  ;;  %v438_v26 = vld [vmem:[%s2203_s5 + $0x520] sm:$0xff] }
  0xe6   :  { %266 = vmatmul.mubr.f32.vlgmr.msra.gmra.mrb[0].mxu1 %v123_v28  ;;  %v1063_v28 = vpack.c.bf16 %v438_v26, %v431_v25  ;;  %v292_v25 = vld [vmem:[%s2203_s5 + $0x90] sm:$0xff]  ;;  %v299_v26 = vld [vmem:[%s2203_s5 + $0xc8] sm:$0xff] }
  0xe7   :  { %1022 = vmatpush1.bf16.msra.mxu1 %v1021_v27  ;;  %v1061_v27 = vpack.c.bf16 %v423_v24, %v416_v23  ;;  %v1085_v23 = vpack.c.bf16 %v285_v11, %v278_v8  ;;  %v355_v11 = vld [vmem:[%s2203_s5 + $0x288] sm:$0xff] }
  0xe8   :  { %1024 = vmatprep.subr.bf16.mxu1 %v1023_v29  ;;  %v430_v29 = vld [vmem:[%s2203_s5 + $0x4e0] sm:$0xff] }
  0xe9   :  { %v1065_v33 = vpack.c.bf16 %v437_v30, %v430_v29  ;;  %v301_v29 = vld [vmem:[%s2203_s5 + $0xd8] sm:$0xff]  ;;  %v307_v30 = vld [vmem:[%s2203_s5 + $0x108] sm:$0xff] }
  0xeb   :  { %1026 = vmatpush1.bf16.msra.mxu1 %v1025_v34  ;;  %v1067_v34 = vpack.c.bf16 %v452_v32, %v445_v31  ;;  %v1087_v31 = vpack.c.bf16 %v300_v19, %v293_v18  ;;  %v357_v18 = vld [vmem:[%s2203_s5 + $0x298] sm:$0xff]  ;;  %v363_v19 = vld [vmem:[%s2203_s5 + $0x2c8] sm:$0xff] }
  0xec   :  { %1028 = vmatprep.subr.bf16.mxu1 %v1027_v35  ;;  %v444_v35 = vld [vmem:[%s2203_s5 + $0x550] sm:$0xff] }
  0xed   :  { %v1069_v39 = vpack.c.bf16 %v451_v36, %v444_v35  ;;  %v427_v35 = vld [vmem:[%s2203_s5 + $0x4c8] sm:$0xff]  ;;  %v1089_v36 = vpack.c.bf16 %v299_v26, %v292_v25  ;;  %v362_v25 = vld [vmem:[%s2203_s5 + $0x2c0] sm:$0xff]  ;;  %v369_v26 = vld [vmem:[%s2203_s5 + $0x2f8] sm:$0xff] }
  0xef   :  { %1030 = vmatpush1.bf16.msra.mxu1 %v1029_v40  ;;  %v1071_v40 = vpack.c.bf16 %v466_v38, %v459_v37  ;;  %v306_v38 = vld [vmem:[%s2203_s5 + $0x100] sm:$0xff] }
  0xf0   :  { %1032 = vmatprep.subr.bf16.mxu1 %v1031_v41  ;;  %v458_v41 = vld [vmem:[%s2203_s5 + $0x5c0] sm:$0xff] }
  0xf1   :  { %v1073_v45 = vpack.c.bf16 %v465_v42, %v458_v41  ;;  %v308_v42 = vld [vmem:[%s2203_s5 + $0x110] sm:$0xff] }
  0xf3   :  { %1034 = vmatpush1.bf16.msra.mxu1 %v1033_v46  ;;  %v1075_v46 = vpack.c.bf16 %v480_v44, %v473_v43  ;;  %v315_v43 = vld [vmem:[%s2203_s5 + $0x148] sm:$0xff]  ;;  %v321_v44 = vld [vmem:[%s2203_s5 + $0x178] sm:$0xff] }
  0xf4   :  { %1036 = vmatprep.subr.bf16.mxu1 %v1035_v47  ;;  %v472_v47 = vld [vmem:[%s2203_s5 + $0x630] sm:$0xff] }
  0xf5   :  { %v1077_v49 = vpack.c.bf16 %v479_v48, %v472_v47  ;;  %v441_v47 = vld [vmem:[%s2203_s5 + $0x538] sm:$0xff] }
  0xf7   :  { %1038 = vmatpush1.bf16.msra.mxu1 %v1037_v52  ;;  %v487_v52 = vld [vmem:[%s2203_s5 + $0x6a8] sm:$0xff] }
  0xf8   :  { %1040 = vmatprep.subr.bf16.mxu1 %v1039_v53  ;;  %v1015_v53 = vpack.c.bf16 %v492_v51, %v485_v50  ;;  %v1079_v57 = vpack.c.bf16 %v494_v54, %v487_v52  ;;  %v320_v50 = vld [vmem:[%s2203_s5 + $0x170] sm:$0xff]  ;;  %v327_v51 = vld [vmem:[%s2203_s5 + $0x1a8] sm:$0xff]  ;;  %v322_v54 = vld [vmem:[%s2203_s5 + $0x180] sm:$0xff] }
  0xfa   :  { %1016 = vmatprep.subr.bf16.mxu0 %v1015_v53 }
  0xfb   :  { %1042 = vmatpush1.bf16.msra.mxu1 %v1041_v58  ;;  %v1017_v58 = vpack.c.bf16 %v491_v56, %v484_v55  ;;  %v329_v55 = vld [vmem:[%s2203_s5 + $0x1b8] sm:$0xff]  ;;  %v335_v56 = vld [vmem:[%s2203_s5 + $0x1e8] sm:$0xff] }
  0xfc   :  { %1044 = vmatprep.subr.bf16.mxu1 %v1043_v59  ;;  %v486_v59 = vld [vmem:[%s2203_s5 + $0x6a0] sm:$0xff] }
  0xfd   :  { %v1081_v61 = vpack.c.bf16 %v493_v60, %v486_v59  ;;  %1018 = vmatpush1.bf16.msra.mxu0 %v1017_v58  ;;  %v448_v58 = vld [vmem:[%s2203_s5 + $0x570] sm:$0xff]  ;;  %v455_v59 = vld [vmem:[%s2203_s5 + $0x5a8] sm:$0xff]  ;;  %v1097_v60 = vpack.c.bf16 %v327_v51, %v320_v50  ;;  %v397_v50 = vld [vmem:[%s2203_s5 + $0x3d8] sm:$0xff] }
  0xfe   :  { %v405_v51 = vld [vmem:[%s2203_s5 + $0x418] sm:$0xff] }
  0xff   :  { %1046 = vmatpush1.bf16.msra.mxu1 %v1045_v0  ;;  %v392_v0 = vld [vmem:[%s2203_s5 + $0x3b0] sm:$0xff] }
 0x100   :  { %1048 = vmatprep.subr.bf16.mxu1 %v1047_v1  ;;  %v1083_v1 = vpack.c.bf16 %v286_v63, %v279_v62  ;;  %v1147_v3 = vpack.c.bf16 %v399_v2, %v392_v0  ;;  %v334_v62 = vld [vmem:[%s2203_s5 + $0x1e0] sm:$0xff]  ;;  %v341_v63 = vld [vmem:[%s2203_s5 + $0x218] sm:$0xff]  ;;  %v336_v2 = vld [vmem:[%s2203_s5 + $0x1f0] sm:$0xff] }
 0x101   :  { %v1101_v8 = vpack.c.bf16 %v341_v63, %v334_v62  ;;  %v425_v62 = vld [vmem:[%s2203_s5 + $0x4b8] sm:$0xff] }
 0x102   :  { %1084 = vmatprep.subr.bf16.mxu0 %v1083_v1  ;;  %v1163_v1 = vpack.c.bf16 %v455_v59, %v448_v58  ;;  %v426_v58 = vld [vmem:[%s2203_s5 + $0x4c0] sm:$0xff]  ;;  %v433_v63 = vld [vmem:[%s2203_s5 + $0x4f8] sm:$0xff] }
 0x103   :  { %1050 = vmatpush1.bf16.msra.mxu1 %v1049_v6  ;;  %v198_v6 = vrot.slane %v189_v4, %v1675_v15  ;;  %v349_v4 = vld [vmem:[%s2203_s5 + $0x258] sm:$0xff] }
 0x104   :  { %1052 = vmatprep.subr.bf16.mxu1 %v1051_v7 }
 0x107   :  { %1054 = vmatpush1.bf16.msra.mxu1 %v1053_v14  ;;  %v280_v14 = vld [vmem:[%s2203_s5 + $0x30] sm:$0xff] }
 0x108   :  { %1056 = vmatprep.subr.bf16.mxu1 %v1055_v16  ;;  %v287_v16 = vld [vmem:[%s2203_s5 + $0x68] sm:$0xff] }
 0x109   :  { %v1149_v24 = vpack.c.bf16 %v287_v16, %v280_v14 }
 0x10b   :  { %1058 = vmatpush1.bf16.msra.mxu1 %v1057_v21  ;;  %v413_v21 = vld [vmem:[%s2203_s5 + $0x458] sm:$0xff] }
 0x10c   :  { %1060 = vmatprep.subr.bf16.mxu1 %v1059_v22  ;;  %v1151_v32 = vpack.c.bf16 %v413_v21, %v406_v20  ;;  %v370_v20 = vld [vmem:[%s2203_s5 + $0x300] sm:$0xff]  ;;  %v476_v21 = vld [vmem:[%s2203_s5 + $0x650] sm:$0xff] }
 0x10f   :  { %1062 = vmatpush1.bf16.msra.mxu1 %v1061_v27 }
 0x110   :  { %1064 = vmatprep.subr.bf16.mxu1 %v1063_v28  ;;  %v294_v28 = vld [vmem:[%s2203_s5 + $0xa0] sm:$0xff] }
 0x111   :  { %v1153_v37 = vpack.c.bf16 %v301_v29, %v294_v28  ;;  %v1107_v28 = vpack.c.bf16 %v370_v20, %v363_v19  ;;  %v467_v19 = vld [vmem:[%s2203_s5 + $0x608] sm:$0xff] }
 0x112   :  { %v475_v20 = vld [vmem:[%s2203_s5 + $0x648] sm:$0xff] }
 0x113   :  { %1066 = vmatpush1.bf16.msra.mxu1 %v1065_v33  ;;  %v314_v33 = vld [vmem:[%s2203_s5 + $0x140] sm:$0xff] }
 0x114   :  { %1068 = vmatprep.subr.bf16.mxu1 %v1067_v34  ;;  %v420_v34 = vld [vmem:[%s2203_s5 + $0x490] sm:$0xff] }
 0x115   :  { %v1155_v41 = vpack.c.bf16 %v427_v35, %v420_v34  ;;  %v490_v34 = vld [vmem:[%s2203_s5 + $0x6c0] sm:$0xff]  ;;  %v497_v35 = vld [vmem:[%s2203_s5 + $0x6f8] sm:$0xff] }
 0x117   :  { %1070 = vmatpush1.bf16.msra.mxu1 %v1069_v39  ;;  %v313_v39 = vld [vmem:[%s2203_s5 + $0x138] sm:$0xff] }
 0x118   :  { %1072 = vmatprep.subr.bf16.mxu1 %v1071_v40  ;;  %v1091_v40 = vpack.c.bf16 %v314_v33, %v307_v30  ;;  %v1093_v48 = vpack.c.bf16 %v313_v39, %v306_v38  ;;  %v364_v30 = vld [vmem:[%s2203_s5 + $0x2d0] sm:$0xff] }
 0x119   :  { %v384_v33 = vld [vmem:[%s2203_s5 + $0x370] sm:$0xff] }
 0x11a   :  { %v376_v38 = vld [vmem:[%s2203_s5 + $0x330] sm:$0xff] }
 0x11b   :  { %1074 = vmatpush1.bf16.msra.mxu1 %v1073_v45  ;;  %v328_v45 = vld [vmem:[%s2203_s5 + $0x1b0] sm:$0xff] }
 0x11c   :  { %1076 = vmatprep.subr.bf16.mxu1 %v1075_v46  ;;  %v434_v46 = vld [vmem:[%s2203_s5 + $0x500] sm:$0xff]  ;;  %v1095_v52 = vpack.c.bf16 %v328_v45, %v321_v44  ;;  %v391_v44 = vld [vmem:[%s2203_s5 + $0x3a8] sm:$0xff] }
 0x11d   :  { %v1159_v53 = vpack.c.bf16 %v441_v47, %v434_v46  ;;  %v398_v45 = vld [vmem:[%s2203_s5 + $0x3e0] sm:$0xff] }
 0x11f   :  { %1078 = vmatpush1.bf16.msra.mxu1 %v1077_v49  ;;  %v1157_v49 = vpack.c.bf16 %v315_v43, %v308_v42  ;;  %v378_v42 = vld [vmem:[%s2203_s5 + $0x340] sm:$0xff]  ;;  %v385_v43 = vld [vmem:[%s2203_s5 + $0x378] sm:$0xff] }
 0x120   :  { %1080 = vmatprep.subr.bf16.mxu1 %v1079_v57  ;;  %v342_v57 = vld [vmem:[%s2203_s5 + $0x220] sm:$0xff]  ;;  %v1177_v47 = vpack.c.bf16 %v385_v43, %v378_v42 }
 0x121   :  { %v1099_v0 = vpack.c.bf16 %v342_v57, %v335_v56  ;;  %v411_v56 = vld [vmem:[%s2203_s5 + $0x448] sm:$0xff] }
 0x122   :  { %v419_v57 = vld [vmem:[%s2203_s5 + $0x488] sm:$0xff] }
 0x123   :  { %1082 = vmatpush1.bf16.msra.mxu1 %v1081_v61  ;;  %v1161_v61 = vpack.c.bf16 %v329_v55, %v322_v54  ;;  %v404_v55 = vld [vmem:[%s2203_s5 + $0x410] sm:$0xff] }
 0x124   :  { %1148 = vmatprep.subr.bf16.mxu1 %v1147_v3  ;;  %v343_v3 = vld [vmem:[%s2203_s5 + $0x228] sm:$0xff]  ;;  %v1121_v59 = vpack.c.bf16 %v411_v56, %v404_v55 }
 0x1b9   :  { %v267_v7 = vpop.f32.mrb[0].mxu1 }
 0x1ba   :  { %v268_v9 = vadd.f32 %v267_v7, %v194_v5  ;;  %v269_v10 = vpop.f32.mrb[1].mxu1  ;;  %v356_v5 = vld [vmem:[%s2203_s5 + $0x290] sm:$0xff]  ;;  %v469_v7 = vld [vmem:[%s2203_s5 + $0x618] sm:$0xff] }
 0x1bb   :  { %v270_v17 = vadd.f32 %v269_v10, %v198_v6  ;;  %v462_v6 = vld [vmem:[%s2203_s5 + $0x5e0] sm:$0xff]  ;;  %v348_v10 = vld [vmem:[%s2203_s5 + $0x250] sm:$0xff]  ;;  %v1103_v14 = vpack.c.bf16 %v356_v5, %v349_v4  ;;  %v439_v4 = vld [vmem:[%s2203_s5 + $0x528] sm:$0xff] }
 0x1bc   :  { %v1924_v27 = vmax.f32 %v268_v9, 0.0  ;;  %v1165_v9 = vpack.c.bf16 %v343_v3, %v336_v2  ;;  %v1167_v16 = vpack.c.bf16 %v469_v7, %v462_v6  ;;  %v432_v3 = vld [vmem:[%s2203_s5 + $0x4f0] sm:$0xff]  ;;  %v447_v5 = vld [vmem:[%s2203_s5 + $0x568] sm:$0xff]  ;;  %v454_v6 = vld [vmem:[%s2203_s5 + $0x5a0] sm:$0xff] }
 0x1bd   :  { %v273_v22 = vmax.f32 %v270_v17, 0.0  ;;  %v350_v17 = vld [vmem:[%s2203_s5 + $0x260] sm:$0xff]  ;;  %v1129_v7 = vpack.c.bf16 %v439_v4, %v432_v3 }
 0x1bf   :  { %599 = vmatprep.mubr.f32.mxu0 %v273_v22  ;;  %670 = vmatprep.mubr.f32.mxu1 %v273_v22 }
 0x1c0   :  { %600 = vmatmul.mubr.f32.vlgmr.msra.gmra.mrb[2].mxu0 %v1924_v27  ;;  %671 = vmatmul.mubr.f32.vlgmr.msra.gmra.mrb[2].mxu1 %v1924_v27 }
 0x1c1   :  { %1086 = vmatpush1.bf16.msra.mxu0 %v1085_v23  ;;  %1150 = vmatpush3.bf16.msra.mxu1 %v1149_v24  ;;  %v1105_v23 = vpack.c.bf16 %v355_v11, %v348_v10  ;;  %v1169_v24 = vpack.c.bf16 %v357_v18, %v350_v17  ;;  %v453_v10 = vld [vmem:[%s2203_s5 + $0x598] sm:$0xff]  ;;  %v460_v18 = vld [vmem:[%s2203_s5 + $0x5d0] sm:$0xff] }
 0x1c2   :  { %741 = vmatprep.mubr.f32.mxu0 %v273_v22  ;;  %812 = vmatprep.mubr.f32.mxu1 %v273_v22  ;;  %v483_v22 = vld [vmem:[%s2203_s5 + $0x688] sm:$0xff]  ;;  %v461_v11 = vld [vmem:[%s2203_s5 + $0x5d8] sm:$0xff] }
 0x1c3   :  { %1088 = vmatprep.subr.bf16.mxu0 %v1087_v31  ;;  %1152 = vmatprep.subr.bf16.mxu1 %v1151_v32  ;;  %v1171_v29 = vpack.c.bf16 %v483_v22, %v476_v21  ;;  %v371_v31 = vld [vmem:[%s2203_s5 + $0x308] sm:$0xff]  ;;  %v377_v32 = vld [vmem:[%s2203_s5 + $0x338] sm:$0xff]  ;;  %v482_v21 = vld [vmem:[%s2203_s5 + $0x680] sm:$0xff]  ;;  %v1137_v22 = vpack.c.bf16 %v467_v19, %v460_v18 }
 0x1c4   :  { %v1111_v39 = vpack.c.bf16 %v384_v33, %v377_v32  ;;  %v495_v32 = vld [vmem:[%s2203_s5 + $0x6e8] sm:$0xff] }
 0x1c5   :  { %1090 = vmatpush1.bf16.msra.mxu0 %v1089_v36  ;;  %1154 = vmatpush3.bf16.msra.mxu1 %v1153_v37  ;;  %v1109_v36 = vpack.c.bf16 %v369_v26, %v362_v25  ;;  %v1173_v37 = vpack.c.bf16 %v371_v31, %v364_v30  ;;  %v481_v25 = vld [vmem:[%s2203_s5 + $0x678] sm:$0xff]  ;;  %v488_v31 = vld [vmem:[%s2203_s5 + $0x6b0] sm:$0xff] }
 0x1c6   :  { %1092 = vmatprep.subr.bf16.mxu0 %v1091_v40  ;;  %1156 = vmatprep.subr.bf16.mxu1 %v1155_v41  ;;  %v1175_v40 = vpack.c.bf16 %v497_v35, %v490_v34  ;;  %v383_v41 = vld [vmem:[%s2203_s5 + $0x368] sm:$0xff]  ;;  %v489_v26 = vld [vmem:[%s2203_s5 + $0x6b8] sm:$0xff]  ;;  %v1145_v33 = vpack.c.bf16 %v495_v32, %v488_v31  ;;  %v510_v34 = vsub.s32 2, %v1666_v12  ;;  %v498_v35 = vld [vmem:[%s2204_s6] sm:$0x7f] }
 0x1c7   :  { %v1113_v46 = vpack.c.bf16 %v383_v41, %v376_v38 }
 0x1c8   :  { %v511_v38 = vrot.slane %v498_v35, %v510_v34 }
 0x1c9   :  { %1094 = vmatpush1.bf16.msra.mxu0 %v1093_v48  ;;  %1158 = vmatpush3.bf16.msra.mxu1 %v1157_v49  ;;  %v1115_v48 = vpack.c.bf16 %v398_v45, %v391_v44  ;;  %v390_v49 = vld [vmem:[%s2203_s5 + $0x3a0] sm:$0xff] }
 0x1ca   :  { %1096 = vmatprep.subr.bf16.mxu0 %v1095_v52  ;;  %1160 = vmatprep.subr.bf16.mxu1 %v1159_v53  ;;  %v412_v52 = vld [vmem:[%s2203_s5 + $0x450] sm:$0xff]  ;;  %v1117_v53 = vpack.c.bf16 %v397_v50, %v390_v49 }
 0x1cb   :  { %v1119_v54 = vpack.c.bf16 %v412_v52, %v405_v51 }
 0x1cd   :  { %1098 = vmatpush1.bf16.msra.mxu0 %v1097_v60  ;;  %1162 = vmatpush3.bf16.msra.mxu1 %v1161_v61  ;;  %v1123_v60 = vpack.c.bf16 %v426_v58, %v419_v57  ;;  %v418_v61 = vld [vmem:[%s2203_s5 + $0x480] sm:$0xff]  ;;  %v518_v57 = vsub.s32 4, %v1666_v12  ;;  %v522_v58 = vsub.s32 5, %v1666_v12 }
 0x1ce   :  { %1100 = vmatprep.subr.bf16.mxu0 %v1099_v0  ;;  %1164 = vmatprep.subr.bf16.mxu1 %v1163_v1  ;;  %v440_v0 = vld [vmem:[%s2203_s5 + $0x530] sm:$0xff]  ;;  %v1125_v1 = vpack.c.bf16 %v425_v62, %v418_v61 }
 0x1cf   :  { %v1127_v2 = vpack.c.bf16 %v440_v0, %v433_v63 }
 0x1d1   :  { %1102 = vmatpush1.bf16.msra.mxu0 %v1101_v8  ;;  %1166 = vmatpush3.bf16.msra.mxu1 %v1165_v9  ;;  %v1131_v8 = vpack.c.bf16 %v454_v6, %v447_v5  ;;  %v446_v9 = vld [vmem:[%s2203_s5 + $0x560] sm:$0xff] }
 0x1d2   :  { %1104 = vmatprep.subr.bf16.mxu0 %v1103_v14  ;;  %1168 = vmatprep.subr.bf16.mxu1 %v1167_v16  ;;  %v468_v14 = vld [vmem:[%s2203_s5 + $0x610] sm:$0xff]  ;;  %v1133_v16 = vpack.c.bf16 %v453_v10, %v446_v9 }
 0x1d3   :  { %v1135_v17 = vpack.c.bf16 %v468_v14, %v461_v11 }
 0x1d5   :  { %1106 = vmatpush1.bf16.msra.mxu0 %v1105_v23  ;;  %1170 = vmatpush3.bf16.msra.mxu1 %v1169_v24  ;;  %v1139_v23 = vpack.c.bf16 %v482_v21, %v475_v20  ;;  %v474_v24 = vld [vmem:[%s2203_s5 + $0x640] sm:$0xff] }
 0x1d6   :  { %1108 = vmatprep.subr.bf16.mxu0 %v1107_v28  ;;  %1172 = vmatprep.subr.bf16.mxu1 %v1171_v29  ;;  %v496_v28 = vld [vmem:[%s2203_s5 + $0x6f0] sm:$0xff]  ;;  %v1141_v29 = vpack.c.bf16 %v481_v25, %v474_v24  ;;  %s1220_s5 = smov [#allocation2]  }
 0x1d7   :  { %v1143_v30 = vpack.c.bf16 %v496_v28, %v489_v26  ;;  %s839_s6 = sshll.u32 %s1220_s5, 4  ;;  %s840_s6 = int_to_ptr.vmem [resolvable:$true] %s839_s6 }
 0x1d8   :  { %s1195_s16 = scalar_lea.vmem %s840_s6, 896  ;;  %p1200_p1 = scmp.lt.s32.totalorder %s840_s6, %s840_s6 }
 0x1d9   :  { %1110 = vmatpush1.bf16.msra.mxu0 %v1109_v36  ;;  %1174 = vmatpush3.bf16.msra.mxu1 %v1173_v37  ;;  %v514_v36 = vsub.s32 3, %v1666_v12  ;;  %v503_v37 = vrot.slane %v498_v35, %v1669_v13  ;;  %p1196_p0 = scmp.ne.s32.totalorder %s840_s6, %s1195_s16  ;;  %p1201_p2 = scmp.lt.s32.totalorder %s1195_s16, %s1195_s16 }
 0x1da   :  { %1112 = vmatprep.subr.bf16.mxu0 %v1111_v39  ;;  %1176 = vmatprep.subr.bf16.mxu1 %v1175_v40  ;;  %v507_v39 = vrot.slane %v498_v35, %v1675_v15  ;;  %v526_v15 = vsub.s32 6, %v1666_v12 }
 0x1db   :  { %v515_v40 = vrot.slane %v498_v35, %v514_v36  ;;  %p1202_p3 = por %p1201_p2, %p1200_p1 }
 0x1dc   :  { %v527_v52 = vrot.slane %v498_v35, %v526_v15 }
 0x1dd   :  { %1114 = vmatpush1.bf16.msra.mxu0 %v1113_v46  ;;  %1178 = vmatpush3.bf16.msra.mxu1 %v1177_v47  ;;  %p1203_p4 = pnand %p1202_p3, %p1196_p0 }
 0x1de   :  { %1116 = vmatprep.subr.bf16.mxu0 %v1115_v48 }
 0x1e0   :  { %813 = vmatmul.mubr.f32.vlgmr.msra.gmra.mrb[4].mxu1 %v1924_v27 }
 0x1e1   :  { %1118 = vmatpush1.bf16.msra.mxu0 %v1117_v53 }
 0x1e2   :  { %1120 = vmatprep.subr.bf16.mxu0 %v1119_v54 }
 0x1e5   :  { %1122 = vmatpush1.bf16.msra.mxu0 %v1121_v59  ;;  %v519_v59 = vrot.slane %v498_v35, %v518_v57 }
 0x1e6   :  { %1124 = vmatprep.subr.bf16.mxu0 %v1123_v60  ;;  %v523_v60 = vrot.slane %v498_v35, %v522_v58 }
 0x1e9   :  { %1126 = vmatpush1.bf16.msra.mxu0 %v1125_v1 }
 0x1ea   :  { %1128 = vmatprep.subr.bf16.mxu0 %v1127_v2 }
 0x1ed   :  { %1130 = vmatpush1.bf16.msra.mxu0 %v1129_v7 }
 0x1ee   :  { %1132 = vmatprep.subr.bf16.mxu0 %v1131_v8 }
 0x1f1   :  { %1134 = vmatpush1.bf16.msra.mxu0 %v1133_v16 }
 0x1f2   :  { %1136 = vmatprep.subr.bf16.mxu0 %v1135_v17 }
 0x1f5   :  { %1138 = vmatpush1.bf16.msra.mxu0 %v1137_v22 }
 0x1f6   :  { %1140 = vmatprep.subr.bf16.mxu0 %v1139_v23 }
 0x1f9   :  { %1142 = vmatpush1.bf16.msra.mxu0 %v1141_v29 }
 0x1fa   :  { %1144 = vmatprep.subr.bf16.mxu0 %v1143_v30 }
 0x1fd   :  { %1146 = vmatpush1.bf16.msra.mxu0 %v1145_v33 }
 0x200   :  { %742 = vmatmul.mubr.f32.vlgmr.msra.gmra.mrb[4].mxu0 %v1924_v27 }
 0x293   :  { %v601_v41 = vpop.f32.mrb[2].mxu0  ;;  %v672_v42 = vpop.f32.mrb[2].mxu1 }
 0x294   :  { %v602_v43 = vadd.f32 %v601_v41, %v503_v37  ;;  %v673_v44 = vadd.f32 %v672_v42, %v511_v38  ;;  %v603_v45 = vpop.f32.mrb[3].mxu0  ;;  %v674_v27 = vpop.f32.mrb[3].mxu1 }
 0x295   :  { %v604_v46 = vadd.f32 %v603_v45, %v507_v39  ;;  %v675_v47 = vadd.f32 %v674_v27, %v515_v40 }
 0x296   :  { %1181 = vtanh.f32 %v602_v43 }
 0x297   :  { %1183 = vtanh.f32 %v673_v44 }
 0x298   :  { %1185 = vtanh.f32 %v604_v46 }
 0x299   :  { %1187 = vtanh.f32 %v675_v47 }
 0x2a0   :  { %v1182_v48 = vpop.eup %1181 }
 0x2a1   :  { %v1184_v49 = vpop.eup %1183  ;;  %825 = vst [vmem:[#allocation2] sm:$0xff] %v1182_v48 }
 0x2a2   :  { %v1186_v13 = vpop.eup %1185  ;;  %827 = vst [vmem:[#allocation2 + $0x10] sm:$0xff] %v1184_v49 }
 0x2a3   :  { %v1188_v50 = vpop.eup %1187  ;;  %826 = vst [vmem:[#allocation2 + $0x8] sm:$0xff] %v1186_v13 }
 0x2a4   :  { %828 = vst [vmem:[#allocation2 + $0x18] sm:$0xff] %v1188_v50 }
 0x2b3   :  { %v880_v51 = vpop.f32.mrb[4].mxu1 }
 0x2b4   :  { %v881_v53 = vpop.f32.mrb[5].mxu1 }
 0x2b5   :  { %v882_v54 = vadd.f32 %v881_v53, %v880_v51 }
 0x2b7   :  { %v815_v55 = vadd.f32 %v882_v54, %v527_v52 }
 0x2b9   :  { %1189 = vtanh.f32 %v815_v55 }
 0x2c3   :  { %v1190_v56 = vpop.eup %1189 }
 0x2c4   :  { %832 = vst.msk [vmem:[#allocation2 + $0x30] sm:$0xff] %vm831_vm1, %v1190_v56 }
 0x2d3   :  { %v743_v61 = vpop.f32.mrb[4].mxu0 }
 0x2d4   :  { %v744_v62 = vadd.f32 %v743_v61, %v519_v59  ;;  %v745_v63 = vpop.f32.mrb[5].mxu0 }
 0x2d5   :  { %v746_v0 = vadd.f32 %v745_v63, %v523_v60 }
 0x2d6   :  { %1191 = vtanh.f32 %v744_v62 }
 0x2d7   :  { %1193 = vtanh.f32 %v746_v0 }
 0x2e0   :  { %v1192_v1 = vpop.eup %1191 }
 0x2e1   :  { %v1194_v2 = vpop.eup %1193  ;;  %829 = vst [vmem:[#allocation2 + $0x20] sm:$0xff] %v1192_v1 }
 0x2e2   :  { %830 = vst [vmem:[#allocation2 + $0x28] sm:$0xff] %v1194_v2 }
 0x2e3   :  { %1206 = shalt.err (!%p1203_p4)
}
 0x2e4   :  { %s1207_s19 = scalar_lea.hbm %s2205_s7, 896 }
 0x2e5   :  { %p1208_p5 = scmp.ne.s32.totalorder %s2205_s7, %s1207_s19  ;;  %p1211_p6 = scmp.lt.u32.totalorder %s1207_s19, %s2205_s7 }
 0x2e7   :  { %p1213_p7 = pnand %p1211_p6, %p1208_p5 }
 0x2e9   :  { %1216 = shalt.err (!%p1213_p7)
}
 0x2ea   :  { %842 = dma.vmem_to_hbm [thread:$0]  %s840_s6, 896, %s2205_s7, [#allocation3]  }
 0x2eb   :  { %1217 = dma.done.wait [#allocation3], 896  }
 0x2ec   :  { %1218 = vsyncadd [#allocation3], 4294966400 }
 0x2ed   :  { %846 = vsyncpa [#allocation3], 1 }

</bundles_post_ra>
